<compile_context>
chip_gen: v7x
topology: tpu7x:2x2x1
jax: 0.10.0
libtpu: 0.0.40
codegen_flags: <defaults>
</compile_context>

<pallas_src>
import math

import jax
import jax.numpy as jnp
from jax import lax
from jax.experimental import pallas as pl
from jax.experimental.pallas import tpu as pltpu


# ----------------------------- kernels -------------------------------------

# lhs (tm, tk) x rhs (tk, tn), contracting lhs dim 1 with rhs dim 0 (== x @ Wt)
_CONTRACT_KN = (((1,), (0,)), ((), ()))


def _linear_kernel(z0_ref, w_ref, b_ref, y0_ref, acc_ref):
    """Plain linear with K-accumulation: y0 = z0 @ Wt + b (Wt is (K, N))."""
    k = pl.program_id(2)

    @pl.when(k == 0)
    def _():
        acc_ref[...] = jnp.zeros_like(acc_ref)

    acc_ref[...] += lax.dot_general(
        z0_ref[...], w_ref[...], _CONTRACT_KN,
        preferred_element_type=jnp.float32)

    @pl.when(k == pl.num_programs(2) - 1)
    def _():
        b = b_ref[...].astype(jnp.float32)            # (1, tn), broadcasts over rows
        y0_ref[...] = (acc_ref[...] + b).astype(y0_ref.dtype)


def _ibp_linear_kernel(z0_ref, z1_ref, z2_ref, w_ref, b_ref,
                       y0_ref, up_ref, lo_ref,
                       acc_y0_ref, acc_mu_ref, acc_r_ref):
    """IBP linear: nominal output plus propagated upper/lower bounds.

    Three back-to-back matmuls against the same loaded weight tile (and its
    |.| taken in-register) -- no concatenated LHS temporary.
    """
    k = pl.program_id(2)

    @pl.when(k == 0)
    def _():
        acc_y0_ref[...] = jnp.zeros_like(acc_y0_ref)
        acc_mu_ref[...] = jnp.zeros_like(acc_mu_ref)
        acc_r_ref[...] = jnp.zeros_like(acc_r_ref)

    w = w_ref[...]                                    # (tk, tn) — W.T layout
    z0 = z0_ref[...]
    mdt = z0.dtype                                    # matmul operand dtype
    # Elementwise mu/r math in f32 (safe on v5e's f32-only VPU), operands cast
    # to the matmul dtype just before the MXU.
    z1 = z1_ref[...].astype(jnp.float32)
    z2 = z2_ref[...].astype(jnp.float32)
    mu = ((z1 + z2) * 0.5).astype(mdt)
    r = ((z1 - z2) * 0.5).astype(mdt)

    # Three matmuls reuse the hot w vregs; |w| is VPU filler next to MXU pushes.
    acc_y0_ref[...] += lax.dot_general(
        z0, w, _CONTRACT_KN, preferred_element_type=jnp.float32)
    acc_mu_ref[...] += lax.dot_general(
        mu, w, _CONTRACT_KN, preferred_element_type=jnp.float32)
    acc_r_ref[...] += lax.dot_general(
        r, jnp.abs(w), _CONTRACT_KN, preferred_element_type=jnp.float32)

    @pl.when(k == pl.num_programs(2) - 1)
    def _():
        b = b_ref[...].astype(jnp.float32)            # (1, tn)
        y0 = acc_y0_ref[...] + b
        mu_out = acc_mu_ref[...] + b
        r_out = acc_r_ref[...]
        y0_ref[...] = y0.astype(y0_ref.dtype)
        up_ref[...] = (mu_out + r_out).astype(up_ref.dtype)
        lo_ref[...] = (mu_out - r_out).astype(lo_ref.dtype)


# ----------------------------- wrapper --------------------------------------

def _round_up(x, m):
    return ((x + m - 1) // m) * m


def _pad2(x, rows, cols):
    r, c = x.shape
    if r == rows and c == cols:
        return x
    return jnp.pad(x, ((0, rows - r), (0, cols - c)))


def _sublane_multiple(dtype):
    # 8 for 32-bit, 16 for bf16, 32 for 8-bit packed dtypes.
    return max(8, 32 // jnp.dtype(dtype).itemsize)


def _vmem_cap_bytes():
    try:
        phys = pltpu.get_tpu_info().vmem_capacity_bytes
    except Exception:
        phys = 64 * 1024 * 1024          # conservative fallback (v7x per-TC)
    return int(phys * 3 // 4)            # leave headroom for compiler scratch


def ibp_linear(zs, weight, bias, *, ibp=False, tm=512, tn=512, tk=512,
               compute_dtype=None):
    """zs: tuple of 1 (ibp=False) or 3 (ibp=True) arrays of shape (B, in_dim).
    weight: (out_dim, in_dim) like nn.Linear.weight. bias: (out_dim,).
    tm/tn/tk: target tile sizes (clamped & aligned to the padded problem).
    compute_dtype: optional matmul-operand dtype (e.g. jnp.bfloat16);
                   accumulation and the final combine stay f32."""
    assert len(zs) == (3 if ibp else 1)
    B, K = zs[0].shape
    N, K2 = weight.shape
    assert K == K2, "weight in_dim mismatch"
    out_dtype = zs[0].dtype

    if compute_dtype is not None:
        zs = tuple(z.astype(compute_dtype) for z in zs)
        weight = weight.astype(compute_dtype)
    cdt = zs[0].dtype
    z_item = jnp.dtype(cdt).itemsize
    w_item = jnp.dtype(weight.dtype).itemsize
    b_item = jnp.dtype(bias.dtype).itemsize
    o_item = jnp.dtype(out_dtype).itemsize
    sub = _sublane_multiple(cdt)

    # Align tiles: rows to the dtype's sublane packing, lane/contraction dims
    # to 128, and never larger than the padded problem dims.
    tm = min(_round_up(tm, sub), _round_up(B, sub))
    tn = min(_round_up(tn, 128), _round_up(N, 128))
    tk = min(_round_up(tk, 128), _round_up(K, 128))

    # Megacore friendliness (v7x: 2 TCs shard "parallel" axes): guarantee at
    # least 2 blocks along a parallel axis when the problem allows it.
    if _round_up(B, tm) // tm == 1 and _round_up(N, tn) // tn == 1:
        n_r = _round_up(N, 128)
        b_r = _round_up(B, sub)
        if n_r >= 256:
            tn = _round_up((n_r + 1) // 2, 128)
        elif b_r >= 2 * sub:
            tm = _round_up((b_r + 1) // 2, sub)

    Bp, Np, Kp = _round_up(B, tm), _round_up(N, tn), _round_up(K, tk)
    grid = (Bp // tm, Np // tn, Kp // tk)
    gi, gj, _ = grid

    zsp = tuple(_pad2(z, Bp, Kp) for z in zs)
    # Pre-transpose W once per call (amortized, outside the kernel loop) so
    # the in-kernel matmul contracts the weight's leading dim — no per-step
    # XLU transpose can be introduced by the lowering.
    wtp = _pad2(weight.T, Kp, Np)
    bp = _pad2(bias.reshape(1, N).astype(bias.dtype), 1, Np)

    z_spec = pl.BlockSpec((tm, tk), lambda i, j, k: (i, k))
    w_spec = pl.BlockSpec((tk, tn), lambda i, j, k: (k, j))
    b_spec = pl.BlockSpec((1, tn), lambda i, j, k: (0, j))
    o_spec = pl.BlockSpec((tm, tn), lambda i, j, k: (i, j))

    n_z = len(zsp)
    n_out = 3 if ibp else 1
    n_acc = 3 if ibp else 1

    flops = 2 * Bp * Np * Kp * n_out
    # Actual HBM traffic: z re-streamed once per N tile, W once per batch tile.
    bytes_accessed = (n_z * Bp * Kp * z_item * gj
                      + Kp * Np * w_item * gi
                      + Np * b_item * gi
                      + n_out * Bp * Np * o_item)
    cost = pl.CostEstimate(flops=flops, transcendentals=0,
                           bytes_accessed=int(bytes_accessed))

    # Double-buffered inputs + outputs + f32 accumulators (single hedge).
    vmem_need = (2 * (n_z * tm * tk * z_item + tk * tn * w_item + tn * b_item)
                 + 2 * n_out * tm * tn * o_item
                 + n_acc * tm * tn * 4)
    vmem_limit = int(min(max(int(vmem_need * 5 // 4), 32 * 1024 * 1024),
                         _vmem_cap_bytes()))
    params = pltpu.CompilerParams(
        dimension_semantics=("parallel", "parallel", "arbitrary"),
        vmem_limit_bytes=vmem_limit,
    )

    if not ibp:
        y0 = pl.pallas_call(
            _linear_kernel,
            grid=grid,
            out_shape=jax.ShapeDtypeStruct((Bp, Np), out_dtype),
            in_specs=[z_spec, w_spec, b_spec],
            out_specs=o_spec,
            scratch_shapes=[pltpu.VMEM((tm, tn), jnp.float32)],
            compiler_params=params,
            cost_estimate=cost,
        )(zsp[0], wtp, bp)
        return (y0[:B, :N],)

    outs = pl.pallas_call(
        _ibp_linear_kernel,
        grid=grid,
        out_shape=tuple(jax.ShapeDtypeStruct((Bp, Np), out_dtype)
                        for _ in range(3)),
        in_specs=[z_spec, z_spec, z_spec, w_spec, b_spec],
        out_specs=(o_spec, o_spec, o_spec),
        scratch_shapes=[pltpu.VMEM((tm, tn), jnp.float32) for _ in range(3)],
        compiler_params=params,
        cost_estimate=cost,
    )(zsp[0], zsp[1], zsp[2], wtp, bp)
    return tuple(o[:B, :N] for o in outs)


# ----------------------------- reference ------------------------------------

def ibp_linear_ref(zs, weight, bias, *, ibp=False):
    if not ibp:
        return (zs[0] @ weight.T + bias,)
    y0 = zs[0] @ weight.T + bias
    mu = (zs[1] + zs[2]) * 0.5
    r = (zs[1] - zs[2]) * 0.5
    mu = mu @ weight.T + bias
    r = r @ jnp.abs(weight).T
    return (y0, mu + r, mu - r)


# ----------------------------- demo -----------------------------------------

if __name__ == "__main__":
    key = jax.random.PRNGKey(0)

    def make_case(k, batch, in_dim, out_dim):
        kw, kb, k0, k1 = jax.random.split(k, 4)
        bound = 1.0 / math.sqrt(in_dim)     # nn.Linear-style init
        weight = jax.random.uniform(kw, (out_dim, in_dim), jnp.float32, -bound, bound)
        bias = jax.random.uniform(kb, (out_dim,), jnp.float32, -bound, bound)
        z0 = jax.random.normal(k0, (batch, in_dim), jnp.float32)
        eps = 0.1 * jnp.abs(jax.random.normal(k1, (batch, in_dim), jnp.float32))
        return weight, bias, z0, z0 + eps, z0 - eps

    def check(outs, refs, tag, atol, rtol):
        for o, r in zip(outs, refs):
            assert o.shape == r.shape, f"{tag}: shape {o.shape} vs {r.shape}"
            assert jnp.allclose(o, r, atol=atol, rtol=rtol), (
                f"{tag}: max abs err {jnp.max(jnp.abs(o - r))}")

    k1, k2, k3 = jax.random.split(key, 3)

    # Case 1: tiny shapes — exercises zero-padding of B/K/N up to tile multiples.
    w, b, z0, zu, zl = make_case(k1, batch=8, in_dim=32, out_dim=32)
    outs = jax.block_until_ready(ibp_linear((z0, zu, zl), w, b, ibp=True))
    check(outs, ibp_linear_ref((z0, zu, zl), w, b, ibp=True),
          "case1 ibp=True", 1e-2, 1e-2)
    outs = jax.block_until_ready(ibp_linear((z0,), w, b, ibp=False))
    check(outs, ibp_linear_ref((z0,), w, b, ibp=False),
          "case1 ibp=False", 1e-2, 1e-2)

    # Case 2: multi-tile grid (2 x 3 x 2) — exercises K accumulation and the
    # bias-add / mu±r / cast at the final K step.
    w, b, z0, zu, zl = make_case(k2, batch=16, in_dim=256, out_dim=384)
    outs = jax.block_until_ready(
        ibp_linear((z0, zu, zl), w, b, ibp=True, tm=8, tn=128, tk=128))
    check(outs, ibp_linear_ref((z0, zu, zl), w, b, ibp=True),
          "case2 ibp=True", 1e-2, 1e-2)
    outs = jax.block_until_ready(
        ibp_linear((z0,), w, b, ibp=False, tm=8, tn=128, tk=128))
    check(outs, ibp_linear_ref((z0,), w, b, ibp=False),
          "case2 ibp=False", 1e-2, 1e-2)

    # Case 3: bf16 operand path with default tiles (also exercises the
    # megacore N-split: grid becomes (1, 2, 1)). f32 accumulation keeps the
    # error bounded; tolerance is loosened for the bf16 input rounding.
    w, b, z0, zu, zl = make_case(k3, batch=64, in_dim=256, out_dim=384)
    outs = jax.block_until_ready(
        ibp_linear((z0, zu, zl), w, b, ibp=True, compute_dtype=jnp.bfloat16))
    check(outs, ibp_linear_ref((z0, zu, zl), w, b, ibp=True),
          "case3 ibp=True bf16", 8e-2, 8e-2)
    outs = jax.block_until_ready(
        ibp_linear((z0,), w, b, ibp=False, compute_dtype=jnp.bfloat16))
    check(outs, ibp_linear_ref((z0,), w, b, ibp=False),
          "case3 ibp=False bf16", 8e-2, 8e-2)

    print("KERNEL_OK")
</pallas_src>

<mosaic_0001>
module attributes {stable_mosaic.version = 11 : i64} {
  func.func @_ibp_linear_kernel(%arg0: i32, %arg1: i32, %arg2: i32, %arg3: memref<8x128xf32, #tpu.memory_space<vmem>>, %arg4: memref<8x128xf32, #tpu.memory_space<vmem>>, %arg5: memref<8x128xf32, #tpu.memory_space<vmem>>, %arg6: memref<128x128xf32, #tpu.memory_space<vmem>>, %arg7: memref<1x128xf32, #tpu.memory_space<vmem>>, %arg8: memref<8x128xf32, #tpu.memory_space<vmem>>, %arg9: memref<8x128xf32, #tpu.memory_space<vmem>>, %arg10: memref<8x128xf32, #tpu.memory_space<vmem>>, %arg11: memref<8x128xf32, #tpu.memory_space<vmem>>, %arg12: memref<8x128xf32, #tpu.memory_space<vmem>>, %arg13: memref<8x128xf32, #tpu.memory_space<vmem>>) attributes {dimension_semantics = [#tpu.dimension_semantics<parallel>, #tpu.dimension_semantics<parallel>, #tpu.dimension_semantics<arbitrary>], iteration_bounds = array<i64: 1, 1, 1>, scalar_prefetch = 0 : i64, scratch_operands = 3 : i64, tpu.core_type = #tpu.core_type<tc>, window_params = [{transform_indices = @transform_0, window_bounds = array<i64: 8, 128>}, {transform_indices = @transform_1, window_bounds = array<i64: 8, 128>}, {transform_indices = @transform_2, window_bounds = array<i64: 8, 128>}, {transform_indices = @transform_3, window_bounds = array<i64: 128, 128>}, {transform_indices = @transform_4, window_bounds = array<i64: 1, 128>}, {transform_indices = @transform_5, window_bounds = array<i64: 8, 128>}, {transform_indices = @transform_6, window_bounds = array<i64: 8, 128>}, {transform_indices = @transform_7, window_bounds = array<i64: 8, 128>}]} {
    %c0_i32 = arith.constant 0 : i32
    %0 = arith.cmpi eq, %arg2, %c0_i32 : i32
    %1 = arith.extui %0 : i1 to i32
    %c0_i32_0 = arith.constant 0 : i32
    %2 = arith.cmpi ne, %1, %c0_i32_0 : i32
    scf.if %2 {
      %cst_26 = arith.constant 0.000000e+00 : f32
      %29 = vector.broadcast %cst_26 : f32 to vector<8x128xf32>
      %c0_27 = arith.constant 0 : index
      %c0_28 = arith.constant 0 : index
      %30 = vector.load %arg11[%c0_27, %c0_28] : memref<8x128xf32, #tpu.memory_space<vmem>>, vector<8x128xf32>
      tpu.vector_store %arg11[%c0_27, %c0_28], %29 {strides = array<i32>} : memref<8x128xf32, #tpu.memory_space<vmem>>, vector<8x128xf32>,
      %cst_29 = arith.constant 0.000000e+00 : f32
      %31 = vector.broadcast %cst_29 : f32 to vector<8x128xf32>
      %c0_30 = arith.constant 0 : index
      %c0_31 = arith.constant 0 : index
      %32 = vector.load %arg12[%c0_30, %c0_31] : memref<8x128xf32, #tpu.memory_space<vmem>>, vector<8x128xf32>
      tpu.vector_store %arg12[%c0_30, %c0_31], %31 {strides = array<i32>} : memref<8x128xf32, #tpu.memory_space<vmem>>, vector<8x128xf32>,
      %cst_32 = arith.constant 0.000000e+00 : f32
      %33 = vector.broadcast %cst_32 : f32 to vector<8x128xf32>
      %c0_33 = arith.constant 0 : index
      %c0_34 = arith.constant 0 : index
      %34 = vector.load %arg13[%c0_33, %c0_34] : memref<8x128xf32, #tpu.memory_space<vmem>>, vector<8x128xf32>
      tpu.vector_store %arg13[%c0_33, %c0_34], %33 {strides = array<i32>} : memref<8x128xf32, #tpu.memory_space<vmem>>, vector<8x128xf32>,
    } else {
    }
    %c0 = arith.constant 0 : index
    %c0_1 = arith.constant 0 : index
    %3 = vector.load %arg6[%c0, %c0_1] : memref<128x128xf32, #tpu.memory_space<vmem>>, vector<128x128xf32>
    %c0_2 = arith.constant 0 : index
    %c0_3 = arith.constant 0 : index
    %4 = vector.load %arg3[%c0_2, %c0_3] : memref<8x128xf32, #tpu.memory_space<vmem>>, vector<8x128xf32>
    %c0_4 = arith.constant 0 : index
    %c0_5 = arith.constant 0 : index
    %5 = vector.load %arg4[%c0_4, %c0_5] : memref<8x128xf32, #tpu.memory_space<vmem>>, vector<8x128xf32>
    %c0_6 = arith.constant 0 : index
    %c0_7 = arith.constant 0 : index
    %6 = vector.load %arg5[%c0_6, %c0_7] : memref<8x128xf32, #tpu.memory_space<vmem>>, vector<8x128xf32>
    %7 = arith.addf %5, %6 : vector<8x128xf32>
    %cst = arith.constant 5.000000e-01 : f32
    %8 = vector.broadcast %cst : f32 to vector<8x128xf32>
    %9 = arith.mulf %7, %8 : vector<8x128xf32>
    %10 = arith.subf %5, %6 : vector<8x128xf32>
    %cst_8 = arith.constant 5.000000e-01 : f32
    %11 = vector.broadcast %cst_8 : f32 to vector<8x128xf32>
    %12 = arith.mulf %10, %11 : vector<8x128xf32>
    %c0_9 = arith.constant 0 : index
    %c0_10 = arith.constant 0 : index
    %13 = vector.load %arg11[%c0_9, %c0_10] : memref<8x128xf32, #tpu.memory_space<vmem>>, vector<8x128xf32>
    %cst_11 = arith.constant dense<0.000000e+00> : vector<8x128xf32>
    %14 = tpu.matmul %4, %3, %cst_11 {dimension_numbers = #tpu.dot_dimension_numbers<[1], [0], [0], [1], [0, 0, 1, 1], [], []>} : vector<8x128xf32>, vector<128x128xf32>, vector<8x128xf32> -> vector<8x128xf32>
    %15 = arith.addf %13, %14 : vector<8x128xf32>
    %c0_12 = arith.constant 0 : index
    %c0_13 = arith.constant 0 : index
    %16 = vector.load %arg11[%c0_12, %c0_13] : memref<8x128xf32, #tpu.memory_space<vmem>>, vector<8x128xf32>
    tpu.vector_store %arg11[%c0_12, %c0_13], %15 {strides = array<i32>} : memref<8x128xf32, #tpu.memory_space<vmem>>, vector<8x128xf32>,
    %c0_14 = arith.constant 0 : index
    %c0_15 = arith.constant 0 : index
    %17 = vector.load %arg12[%c0_14, %c0_15] : memref<8x128xf32, #tpu.memory_space<vmem>>, vector<8x128xf32>
    %cst_16 = arith.constant dense<0.000000e+00> : vector<8x128xf32>
    %18 = tpu.matmul %9, %3, %cst_16 {dimension_numbers = #tpu.dot_dimension_numbers<[1], [0], [0], [1], [0, 0, 1, 1], [], []>} : vector<8x128xf32>, vector<128x128xf32>, vector<8x128xf32> -> vector<8x128xf32>
    %19 = arith.addf %17, %18 : vector<8x128xf32>
    %c0_17 = arith.constant 0 : index
    %c0_18 = arith.constant 0 : index
    %20 = vector.load %arg12[%c0_17, %c0_18] : memref<8x128xf32, #tpu.memory_space<vmem>>, vector<8x128xf32>
    tpu.vector_store %arg12[%c0_17, %c0_18], %19 {strides = array<i32>} : memref<8x128xf32, #tpu.memory_space<vmem>>, vector<8x128xf32>,
    %c0_19 = arith.constant 0 : index
    %c0_20 = arith.constant 0 : index
    %21 = vector.load %arg13[%c0_19, %c0_20] : memref<8x128xf32, #tpu.memory_space<vmem>>, vector<8x128xf32>
    %22 = math.absf %3 : vector<128x128xf32>
    %cst_21 = arith.constant dense<0.000000e+00> : vector<8x128xf32>
    %23 = tpu.matmul %12, %22, %cst_21 {dimension_numbers = #tpu.dot_dimension_numbers<[1], [0], [0], [1], [0, 0, 1, 1], [], []>} : vector<8x128xf32>, vector<128x128xf32>, vector<8x128xf32> -> vector<8x128xf32>
    %24 = arith.addf %21, %23 : vector<8x128xf32>
    %c0_22 = arith.constant 0 : index
    %c0_23 = arith.constant 0 : index
    %25 = vector.load %arg13[%c0_22, %c0_23] : memref<8x128xf32, #tpu.memory_space<vmem>>, vector<8x128xf32>
    tpu.vector_store %arg13[%c0_22, %c0_23], %24 {strides = array<i32>} : memref<8x128xf32, #tpu.memory_space<vmem>>, vector<8x128xf32>,
    %c0_i32_24 = arith.constant 0 : i32
    %26 = arith.cmpi eq, %arg2, %c0_i32_24 : i32
    %27 = arith.extui %26 : i1 to i32
    %c0_i32_25 = arith.constant 0 : i32
    %28 = arith.cmpi ne, %27, %c0_i32_25 : i32
    scf.if %28 {
      %c0_26 = arith.constant 0 : index
      %c0_27 = arith.constant 0 : index
      %29 = vector.load %arg7[%c0_26, %c0_27] : memref<1x128xf32, #tpu.memory_space<vmem>>, vector<1x128xf32>
      %c0_28 = arith.constant 0 : index
      %c0_29 = arith.constant 0 : index
      %30 = vector.load %arg11[%c0_28, %c0_29] : memref<8x128xf32, #tpu.memory_space<vmem>>, vector<8x128xf32>
      %31 = vector.broadcast %29 : vector<1x128xf32> to vector<8x128xf32>
      %32 = arith.addf %30, %31 : vector<8x128xf32>
      %c0_30 = arith.constant 0 : index
      %c0_31 = arith.constant 0 : index
      %33 = vector.load %arg12[%c0_30, %c0_31] : memref<8x128xf32, #tpu.memory_space<vmem>>, vector<8x128xf32>
      %34 = vector.broadcast %29 : vector<1x128xf32> to vector<8x128xf32>
      %35 = arith.addf %33, %34 : vector<8x128xf32>
      %c0_32 = arith.constant 0 : index
      %c0_33 = arith.constant 0 : index
      %36 = vector.load %arg13[%c0_32, %c0_33] : memref<8x128xf32, #tpu.memory_space<vmem>>, vector<8x128xf32>
      %c0_34 = arith.constant 0 : index
      %c0_35 = arith.constant 0 : index
      %37 = vector.load %arg8[%c0_34, %c0_35] : memref<8x128xf32, #tpu.memory_space<vmem>>, vector<8x128xf32>
      tpu.vector_store %arg8[%c0_34, %c0_35], %32 {strides = array<i32>} : memref<8x128xf32, #tpu.memory_space<vmem>>, vector<8x128xf32>,
      %38 = arith.addf %35, %36 : vector<8x128xf32>
      %c0_36 = arith.constant 0 : index
      %c0_37 = arith.constant 0 : index
      %39 = vector.load %arg9[%c0_36, %c0_37] : memref<8x128xf32, #tpu.memory_space<vmem>>, vector<8x128xf32>
      tpu.vector_store %arg9[%c0_36, %c0_37], %38 {strides = array<i32>} : memref<8x128xf32, #tpu.memory_space<vmem>>, vector<8x128xf32>,
      %40 = arith.subf %35, %36 : vector<8x128xf32>
      %c0_38 = arith.constant 0 : index
      %c0_39 = arith.constant 0 : index
      %41 = vector.load %arg10[%c0_38, %c0_39] : memref<8x128xf32, #tpu.memory_space<vmem>>, vector<8x128xf32>
      tpu.vector_store %arg10[%c0_38, %c0_39], %40 {strides = array<i32>} : memref<8x128xf32, #tpu.memory_space<vmem>>, vector<8x128xf32>,
    } else {
    }
    return
  }
  func.func @transform_0(%arg0: i32, %arg1: i32, %arg2: i32) -> (i32, i32) {
    %c0_i32 = arith.constant 0 : i32
    return %arg0, %arg2 : i32, i32
  }
  func.func @transform_1(%arg0: i32, %arg1: i32, %arg2: i32) -> (i32, i32) {
    %c0_i32 = arith.constant 0 : i32
    return %arg0, %arg2 : i32, i32
  }
  func.func @transform_2(%arg0: i32, %arg1: i32, %arg2: i32) -> (i32, i32) {
    %c0_i32 = arith.constant 0 : i32
    return %arg0, %arg2 : i32, i32
  }
  func.func @transform_3(%arg0: i32, %arg1: i32, %arg2: i32) -> (i32, i32) {
    %c0_i32 = arith.constant 0 : i32
    return %arg2, %arg1 : i32, i32
  }
  func.func @transform_4(%arg0: i32, %arg1: i32, %arg2: i32) -> (i32, i32) {
    %c0_i32 = arith.constant 0 : i32
    %c0_i32_0 = arith.constant 0 : i32
    return %c0_i32, %arg1 : i32, i32
  }
  func.func @transform_5(%arg0: i32, %arg1: i32, %arg2: i32) -> (i32, i32) {
    %c0_i32 = arith.constant 0 : i32
    return %arg0, %arg1 : i32, i32
  }
  func.func @transform_6(%arg0: i32, %arg1: i32, %arg2: i32) -> (i32, i32) {
    %c0_i32 = arith.constant 0 : i32
    return %arg0, %arg1 : i32, i32
  }
  func.func @transform_7(%arg0: i32, %arg1: i32, %arg2: i32) -> (i32, i32) {
    %c0_i32 = arith.constant 0 : i32
    return %arg0, %arg1 : i32, i32
  }
}

</mosaic_0001>

<bundles_post_ra>
// kernel: tpu_custom_call.1
= control target key start
LH: loop header
LB: loop body
LE: loop exit
PB: predicated region body
PF: predicated region fallthrough
CT: control target
= control target key end

     0   :  { %13 = vsyncpa [#allocation6], 0  ;;  %s1016_s0 = inlined_call_operand.hbm [shape: f32[8,128], index: 0, kind: input, shape index: {}]   ;;  %s1017_s1 = inlined_call_operand.hbm [shape: f32[8,128], index: 1, kind: input, shape index: {}]   ;;  %s1018_s2 = inlined_call_operand.hbm [shape: f32[8,128], index: 2, kind: input, shape index: {}]   ;;  %s1019_s3 = inlined_call_operand.hbm [shape: f32[128,128], index: 3, kind: input, shape index: {}]   ;;  %s1020_s4 = inlined_call_operand.vmem [shape: f32[1,128], index: 4, kind: input, shape index: {}]   ;;  %s1021_s5 = inlined_call_operand.hbm [shape: f32[8,128], index: 5, kind: output, shape index: {0}]   ;;  %s1022_s6 = inlined_call_operand.hbm [shape: f32[8,128], index: 6, kind: output, shape index: {1}]   ;;  %s1023_s7 = inlined_call_operand.hbm [shape: f32[8,128], index: 7, kind: output, shape index: {2}]  }
   0x1   :  { %14 = vsyncpa [#allocation9], 0 }
   0x2   :  { %15 = vsyncpa [#allocation12], 0 }
   0x3   :  { %16 = vsyncpa [#allocation7], 0 }
   0x4   :  { %17 = vsyncpa [#allocation15], 0  ;;  %s808_s24 = smov [#allocation8]   ;;  %s809_s26 = smov [#allocation5]  }
   0x5   :  { %s34_s25 = sshll.u32 %s808_s24, 4  ;;  %s24_s27 = sshll.u32 %s809_s26, 4  ;;  %s35_s25 = int_to_ptr.vmem [resolvable:$true] %s34_s25  ;;  %s25_s27 = int_to_ptr.vmem [resolvable:$true] %s24_s27 }
   0x6   :  { %s644_s30 = scalar_lea.hbm %s1017_s1, 128 }
   0x7   :  { %p645_p0 = scmp.ne.s32.totalorder %s1017_s1, %s644_s30  ;;  %p648_p1 = scmp.lt.u32.totalorder %s644_s30, %s1017_s1 }
   0x9   :  { %p650_p2 = pnand %p648_p1, %p645_p0 }
   0xb   :  { %653 = shalt.err (!%p650_p2)
}
   0xc   :  { %s654_s12 = scalar_lea.vmem %s35_s25, 128  ;;  %p659_p4 = scmp.lt.s32.totalorder %s35_s25, %s35_s25 }
   0xd   :  { %p655_p3 = scmp.ne.s32.totalorder %s35_s25, %s654_s12  ;;  %p660_p5 = scmp.lt.s32.totalorder %s654_s12, %s654_s12 }
   0xf   :  { %p661_p6 = por %p660_p5, %p659_p4 }
  0x11   :  { %p662_p7 = pnand %p661_p6, %p655_p3 }
  0x13   :  { %665 = shalt.err (!%p662_p7)
}
  0x14   :  { %37 = dma.hbm_to_vmem [thread:$0]  %s1017_s1, 128, %s35_s25, [#allocation9]  }
  0x15   :  { %s666_s17 = scalar_lea.hbm %s1016_s0, 128 }
  0x16   :  { %p667_p8 = scmp.ne.s32.totalorder %s1016_s0, %s666_s17  ;;  %p670_p9 = scmp.lt.u32.totalorder %s666_s17, %s1016_s0 }
  0x18   :  { %p672_p10 = pnand %p670_p9, %p667_p8 }
  0x1a   :  { %675 = shalt.err (!%p672_p10)
}
  0x1b   :  { %s676_s22 = scalar_lea.vmem %s25_s27, 128  ;;  %p681_p12 = scmp.lt.s32.totalorder %s25_s27, %s25_s27 }
  0x1c   :  { %p677_p11 = scmp.ne.s32.totalorder %s25_s27, %s676_s22  ;;  %p682_p13 = scmp.lt.s32.totalorder %s676_s22, %s676_s22 }
  0x1e   :  { %p683_p0 = por %p682_p13, %p681_p12 }
  0x20   :  { %p684_p1 = pnand %p683_p0, %p677_p11 }
  0x22   :  { %687 = shalt.err (!%p684_p1)
}
  0x23   :  { %27 = dma.hbm_to_vmem [thread:$0]  %s1016_s0, 128, %s25_s27, [#allocation6]  }
  0x24   :  { %s810_s24 = smov [#allocation10]   ;;  %s811_s26 = smov [#allocation11]  }
  0x25   :  { %s44_s25 = sshll.u32 %s810_s24, 4  ;;  %s53_s28 = sshll.u32 %s811_s26, 4  ;;  %s45_s25 = int_to_ptr.vmem [resolvable:$true] %s44_s25  ;;  %s884_s28 = int_to_ptr.vmem [resolvable:$true] %s53_s28 }
  0x26   :  { %s688_s8 = scalar_lea.hbm %s1018_s2, 128 }
  0x27   :  { %p689_p2 = scmp.ne.s32.totalorder %s1018_s2, %s688_s8  ;;  %p692_p3 = scmp.lt.u32.totalorder %s688_s8, %s1018_s2 }
  0x29   :  { %p694_p4 = pnand %p692_p3, %p689_p2 }
  0x2b   :  { %697 = shalt.err (!%p694_p4)
}
  0x2c   :  { %s698_s0 = scalar_lea.vmem %s45_s25, 128  ;;  %p703_p6 = scmp.lt.s32.totalorder %s45_s25, %s45_s25 }
  0x2d   :  { %p699_p5 = scmp.ne.s32.totalorder %s45_s25, %s698_s0  ;;  %p704_p7 = scmp.lt.s32.totalorder %s698_s0, %s698_s0 }
  0x2f   :  { %p705_p8 = por %p704_p7, %p703_p6 }
  0x31   :  { %p706_p9 = pnand %p705_p8, %p699_p5 }
  0x33   :  { %709 = shalt.err (!%p706_p9)
}
  0x34   :  { %47 = dma.hbm_to_vmem [thread:$0]  %s1018_s2, 128, %s45_s25, [#allocation9]  }
  0x35   :  { %s710_s16 = scalar_lea.hbm %s1019_s3, 2048 }
  0x36   :  { %p711_p10 = scmp.ne.s32.totalorder %s1019_s3, %s710_s16  ;;  %p714_p11 = scmp.lt.u32.totalorder %s710_s16, %s1019_s3 }
  0x38   :  { %p716_p12 = pnand %p714_p11, %p711_p10 }
  0x3a   :  { %719 = shalt.err (!%p716_p12)
}
  0x3b   :  { %s720_s21 = scalar_lea.vmem %s884_s28, 2048  ;;  %p725_p0 = scmp.lt.s32.totalorder %s884_s28, %s884_s28 }
  0x3c   :  { %p721_p13 = scmp.ne.s32.totalorder %s884_s28, %s720_s21  ;;  %p726_p1 = scmp.lt.s32.totalorder %s720_s21, %s720_s21 }
  0x3e   :  { %p727_p2 = por %p726_p1, %p725_p0 }
  0x40   :  { %p728_p3 = pnand %p727_p2, %p721_p13 }
  0x42   :  { %731 = shalt.err (!%p728_p3)
}
  0x43   :  { %s812_s2 = smov 128   ;;  %s813_s22 = smov 8  }
  0x44   :  { %59 = dma.hbm_to_vmem [thread:$0]  %s1019_s3, 2048, %s884_s28, [#allocation12], %s812_s2, %s812_s2, %s813_s22  }
  0x45   :  { %798 = dma.done.wait [#allocation6], 128  }
  0x46   :  { %799 = vsyncadd [#allocation6], 4294967168 }
  0x47   :  { %800 = dma.done.wait [#allocation9], 256  }
  0x48   :  { %801 = vsyncadd [#allocation9], 4294967040 }
  0x49   :  { %802 = dma.done.wait [#allocation12], 2048  }
  0x4a   :  { %803 = vsyncadd [#allocation12], 4294965248  ;;  %v814_v0 = vmov 0.0|0.0   ;;  %vm815_vm0 = vmmov 0   ;;  %v816_v1 = vmov 0.0   ;;  %v81_v2 = vld [vmem:[#allocation11] sm:$0xff] }
  0x4b   :  { %560 = vmatprep.subr.bf16.mxu0 %v814_v0  ;;  %584 = vmatprep.subr.bf16.mxu1 %v814_v0  ;;  %v82_v3 = vld [vmem:[#allocation11 + $0x8] sm:$0xff]  ;;  %v921_v4 = vld [vmem:[#allocation11 + $0x10] sm:$0xff]  ;;  %v923_v6 = vld [vmem:[#allocation11 + $0x18] sm:$0xff]  ;;  %v251_v28 = vand.u32 2147483647, %v81_v2  ;;  %s817_s25 = smov [#allocation13]  }
  0x4c   :  { %487 = vmatprep.mubr.msk.f32.mxu0 %vm815_vm0, %v816_v1  ;;  %522 = vmatprep.mubr.msk.f32.mxu1 %vm815_vm0, %v816_v1  ;;  %v561_v5 = vpack.c.bf16 %v82_v3, %v81_v2  ;;  %v564_v7 = vpack.c.bf16 %v923_v6, %v921_v4  ;;  %v928_v8 = vld [vmem:[#allocation11 + $0x20] sm:$0xff]  ;;  %v930_v9 = vld [vmem:[#allocation11 + $0x28] sm:$0xff]  ;;  %v936_v11 = vld [vmem:[#allocation11 + $0x30] sm:$0xff]  ;;  %v252_v29 = vand.u32 2147483647, %v82_v3  ;;  %s365_s26 = sshll.u32 %s817_s25, 4  ;;  %s366_s26 = int_to_ptr.vmem [resolvable:$true] %s365_s26 }
  0x4d   :  { %v567_v10 = vpack.c.bf16 %v930_v9, %v928_v8  ;;  %v938_v12 = vld [vmem:[#allocation11 + $0x38] sm:$0xff]  ;;  %v944_v14 = vld [vmem:[#allocation11 + $0x40] sm:$0xff]  ;;  %v946_v15 = vld [vmem:[#allocation11 + $0x48] sm:$0xff]  ;;  %v253_v33 = vand.u32 2147483647, %v921_v4  ;;  %s732_s28 = scalar_lea.vmem %s366_s26, 128  ;;  %p737_p5 = scmp.lt.s32.totalorder %s366_s26, %s366_s26 }
  0x4e   :  { %562 = vmatpush3.bf16.msra.mxu0 %v561_v5  ;;  %586 = vmatpush3.bf16.msra.mxu1 %v561_v5  ;;  %v570_v13 = vpack.c.bf16 %v938_v12, %v936_v11  ;;  %v573_v16 = vpack.c.bf16 %v946_v15, %v944_v14  ;;  %v91_v17 = vld [vmem:[#allocation11 + $0x50] sm:$0xff]  ;;  %v92_v18 = vld [vmem:[#allocation11 + $0x58] sm:$0xff]  ;;  %v93_v20 = vld [vmem:[#allocation11 + $0x60] sm:$0xff]  ;;  %v609_v32 = vpack.c.bf16 %v252_v29, %v251_v28  ;;  %v254_v34 = vand.u32 2147483647, %v923_v6  ;;  %p733_p4 = scmp.ne.s32.totalorder %s366_s26, %s732_s28  ;;  %p738_p6 = scmp.lt.s32.totalorder %s732_s28, %s732_s28 }
  0x4f   :  { %563 = vmatprep.subr.bf16.mxu0 %v814_v0  ;;  %587 = vmatprep.subr.bf16.mxu1 %v814_v0  ;;  %v576_v19 = vpack.c.bf16 %v92_v18, %v91_v17  ;;  %v94_v21 = vld [vmem:[#allocation11 + $0x68] sm:$0xff]  ;;  %v98_v23 = vld [vmem:[#allocation8] sm:$0xff]  ;;  %v99_v24 = vld [vmem:[#allocation10] sm:$0xff]  ;;  %v255_v36 = vand.u32 2147483647, %v928_v8 }
  0x50   :  { %v579_v22 = vpack.c.bf16 %v94_v21, %v93_v20  ;;  %v95_v25 = vld [vmem:[#allocation11 + $0x70] sm:$0xff]  ;;  %v96_v26 = vld [vmem:[#allocation11 + $0x78] sm:$0xff]  ;;  %v100_v27 = vadd.f32 %v99_v24, %v98_v23  ;;  %v97_v35 = vld [vmem:[#allocation5] sm:$0xff]  ;;  %v256_v37 = vand.u32 2147483647, %v930_v9  ;;  %v612_v38 = vpack.c.bf16 %v254_v34, %v253_v33  ;;  %p739_p7 = por %p738_p6, %p737_p5 }
  0x51   :  { %v582_v30 = vpack.c.bf16 %v96_v26, %v95_v25  ;;  %v257_v39 = vand.u32 2147483647, %v936_v11  ;;  %v258_v40 = vand.u32 2147483647, %v938_v12  ;;  %v259_v42 = vand.u32 2147483647, %v944_v14 }
  0x52   :  { %565 = vmatpush3.bf16.msra.mxu0 %v564_v7  ;;  %589 = vmatpush3.bf16.msra.mxu1 %v564_v7  ;;  %v101_v31 = vmul.f32 0.5, %v100_v27  ;;  %v615_v41 = vpack.c.bf16 %v256_v37, %v255_v36  ;;  %v260_v43 = vand.u32 2147483647, %v946_v15  ;;  %v261_v45 = vand.u32 2147483647, %v91_v17  ;;  %p740_p8 = pnand %p739_p7, %p733_p4 }
  0x53   :  { %566 = vmatprep.subr.bf16.mxu0 %v814_v0  ;;  %590 = vmatprep.subr.bf16.mxu1 %v814_v0  ;;  %v618_v44 = vpack.c.bf16 %v258_v40, %v257_v39  ;;  %v262_v46 = vand.u32 2147483647, %v92_v18  ;;  %v263_v48 = vand.u32 2147483647, %v93_v20  ;;  %v264_v49 = vand.u32 2147483647, %v94_v21 }
  0x54   :  { %v621_v47 = vpack.c.bf16 %v260_v43, %v259_v42  ;;  %v265_v51 = vand.u32 2147483647, %v95_v25  ;;  %v266_v52 = vand.u32 2147483647, %v96_v26  ;;  %v102_v54 = vsub.f32 %v98_v23, %v99_v24  ;;  %v403_v57 = vld [vmem:[%s1020_s4] ss:$0 sm:$0xff] }
  0x55   :  { %v624_v50 = vpack.c.bf16 %v262_v46, %v261_v45  ;;  %v627_v53 = vpack.c.bf16 %v264_v49, %v263_v48 }
  0x56   :  { %568 = vmatpush3.bf16.msra.mxu0 %v567_v10  ;;  %592 = vmatpush3.bf16.msra.mxu1 %v567_v10  ;;  %v630_v55 = vpack.c.bf16 %v266_v52, %v265_v51  ;;  %v103_v56 = vmul.f32 0.5, %v102_v54 }
  0x57   :  { %569 = vmatprep.subr.bf16.mxu0 %v814_v0  ;;  %593 = vmatprep.subr.bf16.mxu1 %v814_v0 }
  0x5a   :  { %571 = vmatpush3.bf16.msra.mxu0 %v570_v13  ;;  %595 = vmatpush3.bf16.msra.mxu1 %v570_v13 }
  0x5b   :  { %572 = vmatprep.subr.bf16.mxu0 %v814_v0  ;;  %596 = vmatprep.subr.bf16.mxu1 %v814_v0 }
  0x5e   :  { %574 = vmatpush3.bf16.msra.mxu0 %v573_v16  ;;  %598 = vmatpush3.bf16.msra.mxu1 %v573_v16 }
  0x5f   :  { %575 = vmatprep.subr.bf16.mxu0 %v814_v0  ;;  %599 = vmatprep.subr.bf16.mxu1 %v814_v0 }
  0x62   :  { %577 = vmatpush3.bf16.msra.mxu0 %v576_v19  ;;  %601 = vmatpush3.bf16.msra.mxu1 %v576_v19 }
  0x63   :  { %578 = vmatprep.subr.bf16.mxu0 %v814_v0  ;;  %602 = vmatprep.subr.bf16.mxu1 %v814_v0 }
  0x66   :  { %580 = vmatpush3.bf16.msra.mxu0 %v579_v22  ;;  %604 = vmatpush3.bf16.msra.mxu1 %v579_v22 }
  0x67   :  { %581 = vmatprep.subr.bf16.mxu0 %v814_v0  ;;  %605 = vmatprep.subr.bf16.mxu1 %v814_v0 }
  0x6a   :  { %583 = vmatpush3.bf16.msra.mxu0 %v582_v30  ;;  %607 = vmatpush3.bf16.msra.mxu1 %v582_v30 }
  0x6b   :  { %608 = vmatprep.subr.bf16.mxu0 %v814_v0 }
  0x6d   :  { %488 = vmatmul.mubr.f32.vlgmr.msra.gmra.mrb[0].mxu0 %v97_v35  ;;  %523 = vmatmul.mubr.f32.vlgmr.msra.gmra.mrb[0].mxu1 %v101_v31 }
  0x6e   :  { %610 = vmatpush3.bf16.msra.mxu0 %v609_v32  ;;  %557 = vmatprep.mubr.msk.f32.mxu0 %vm815_vm0, %v816_v1 }
  0x6f   :  { %611 = vmatprep.subr.bf16.mxu0 %v814_v0 }
  0x72   :  { %613 = vmatpush3.bf16.msra.mxu0 %v612_v38 }
  0x73   :  { %614 = vmatprep.subr.bf16.mxu0 %v814_v0 }
  0x76   :  { %616 = vmatpush3.bf16.msra.mxu0 %v615_v41 }
  0x77   :  { %617 = vmatprep.subr.bf16.mxu0 %v814_v0 }
  0x7a   :  { %619 = vmatpush3.bf16.msra.mxu0 %v618_v44 }
  0x7b   :  { %620 = vmatprep.subr.bf16.mxu0 %v814_v0 }
  0x7e   :  { %622 = vmatpush3.bf16.msra.mxu0 %v621_v47 }
  0x7f   :  { %623 = vmatprep.subr.bf16.mxu0 %v814_v0 }
  0x82   :  { %625 = vmatpush3.bf16.msra.mxu0 %v624_v50 }
  0x83   :  { %626 = vmatprep.subr.bf16.mxu0 %v814_v0 }
  0x86   :  { %628 = vmatpush3.bf16.msra.mxu0 %v627_v53 }
  0x87   :  { %629 = vmatprep.subr.bf16.mxu0 %v814_v0 }
  0x8a   :  { %631 = vmatpush3.bf16.msra.mxu0 %v630_v55 }
  0x8d   :  { %558 = vmatmul.mubr.f32.vlgmr.msra.gmra.mrb[2].mxu0 %v103_v56 }
 0x140   :  { %v171_v58 = vpop.f32.mrb[0].mxu0  ;;  %v244_v59 = vpop.f32.mrb[0].mxu1 }
 0x141   :  { %v350_v60 = vadd.f32 %v403_v57, %v171_v58  ;;  %v489_v61 = vpop.f32.mrb[1].mxu0  ;;  %v524_v62 = vpop.f32.mrb[1].mxu1 }
 0x143   :  { %354 = vst [vmem:[#allocation13] sm:$0xff] %v350_v60 }
 0x144   :  { %743 = shalt.err (!%p740_p8)
}
 0x145   :  { %s744_s4 = scalar_lea.hbm %s1021_s5, 128 }
 0x146   :  { %p745_p9 = scmp.ne.s32.totalorder %s1021_s5, %s744_s4  ;;  %p748_p10 = scmp.lt.u32.totalorder %s744_s4, %s1021_s5 }
 0x148   :  { %p750_p11 = pnand %p748_p10, %p745_p9 }
 0x14a   :  { %753 = shalt.err (!%p750_p11)
}
 0x14b   :  { %368 = dma.vmem_to_hbm [thread:$0]  %s366_s26, 128, %s1021_s5, [#allocation7]   ;;  %v352_v63 = vadd.f32 %v403_v57, %v244_v59 }
 0x14c   :  { %s818_s27 = smov [#allocation14]   ;;  %s819_s14 = smov [#allocation16]  }
 0x14d   :  { %s375_s13 = sshll.u32 %s818_s27, 4  ;;  %s385_s15 = sshll.u32 %s819_s14, 4  ;;  %s376_s13 = int_to_ptr.vmem [resolvable:$true] %s375_s13  ;;  %s386_s15 = int_to_ptr.vmem [resolvable:$true] %s385_s15 }
 0x14e   :  { %s754_s16 = scalar_lea.vmem %s376_s13, 128  ;;  %p759_p13 = scmp.lt.s32.totalorder %s376_s13, %s376_s13 }
 0x14f   :  { %p755_p12 = scmp.ne.s32.totalorder %s376_s13, %s754_s16  ;;  %p760_p0 = scmp.lt.s32.totalorder %s754_s16, %s754_s16 }
 0x151   :  { %p761_p1 = por %p760_p0, %p759_p13 }
 0x153   :  { %p762_p2 = pnand %p761_p1, %p755_p12 }
 0x160   :  { %v333_v0 = vpop.f32.mrb[2].mxu0 }
 0x161   :  { %v355_v1 = vadd.f32 %v352_v63, %v333_v0  ;;  %v357_v2 = vsub.f32 %v352_v63, %v333_v0  ;;  %v559_v3 = vpop.f32.mrb[3].mxu0 }
 0x163   :  { %356 = vst [vmem:[#allocation14] sm:$0xff] %v355_v1  ;;  %358 = vst [vmem:[#allocation16] sm:$0xff] %v357_v2 }
 0x164   :  { %765 = shalt.err (!%p762_p2)
}
 0x165   :  { %s766_s18 = scalar_lea.hbm %s1022_s6, 128 }
 0x166   :  { %p767_p3 = scmp.ne.s32.totalorder %s1022_s6, %s766_s18  ;;  %p770_p4 = scmp.lt.u32.totalorder %s766_s18, %s1022_s6 }
 0x168   :  { %p772_p5 = pnand %p770_p4, %p767_p3 }
 0x16a   :  { %775 = shalt.err (!%p772_p5)
}
 0x16b   :  { %378 = dma.vmem_to_hbm [thread:$0]  %s376_s13, 128, %s1022_s6, [#allocation15]  }
 0x16c   :  { %s776_s23 = scalar_lea.vmem %s386_s15, 128  ;;  %p781_p7 = scmp.lt.s32.totalorder %s386_s15, %s386_s15 }
 0x16d   :  { %p777_p6 = scmp.ne.s32.totalorder %s386_s15, %s776_s23  ;;  %p782_p8 = scmp.lt.s32.totalorder %s776_s23, %s776_s23 }
 0x16f   :  { %p783_p9 = por %p782_p8, %p781_p7 }
 0x171   :  { %p784_p10 = pnand %p783_p9, %p777_p6 }
 0x173   :  { %787 = shalt.err (!%p784_p10)
}
 0x174   :  { %s788_s25 = scalar_lea.hbm %s1023_s7, 128 }
 0x175   :  { %p789_p11 = scmp.ne.s32.totalorder %s1023_s7, %s788_s25  ;;  %p792_p12 = scmp.lt.u32.totalorder %s788_s25, %s1023_s7 }
 0x177   :  { %p794_p13 = pnand %p792_p12, %p789_p11 }
 0x179   :  { %797 = shalt.err (!%p794_p13)
}
 0x17a   :  { %388 = dma.vmem_to_hbm [thread:$0]  %s386_s15, 128, %s1023_s7, [#allocation15]  }
 0x17b   :  { %804 = dma.done.wait [#allocation7], 128  }
 0x17c   :  { %805 = vsyncadd [#allocation7], 4294967168 }
 0x17d   :  { %806 = dma.done.wait [#allocation15], 256  }
 0x17e   :  { %807 = vsyncadd [#allocation15], 4294967040 }
 0x17f   :  { %398 = vsyncpa [#allocation6], 1 }
 0x180   :  { %399 = vsyncpa [#allocation9], 1 }
 0x181   :  { %400 = vsyncpa [#allocation12], 1 }
 0x182   :  { %401 = vsyncpa [#allocation7], 1 }
 0x183   :  { %402 = vsyncpa [#allocation15], 1 }

</bundles_post_ra>
